<compile_context>
chip_gen: v6e
topology: v6e:2x2x1
jax: 0.10.0
libtpu: 0.0.40
codegen_flags: <defaults>
</compile_context>

<pallas_src>
import functools

import jax
import jax.numpy as jnp
from jax import lax
from jax.experimental import pallas as pl
from jax.experimental.pallas import tpu as pltpu


def _round_up(n: int, m: int) -> int:
    return ((n + m - 1) // m) * m


def mlp_kernel(w1_ref, b1_ref, w2_ref, b2_ref, x_ref, o_ref):
    """x_ref / o_ref: (3, st, 128) sublane+lane dense f32 VMEM tiles.
    w1_ref / w2_ref: (9,) f32 in SMEM (PyTorch (out, in) row-major). b1_ref / b2_ref: (3,) f32."""
    st = x_ref.shape[1]
    # Chunk of sublane-groups per inner step: one (8, 128) vreg per feature slab keeps the live
    # set small; fall back to the whole (tiny) tile when st is not a multiple of 8.
    C = 8 if (st >= 8 and st % 8 == 0) else st
    nchunks = st // C

    # Hoist the 24 SMEM scalar reads and their vector splats above the chunk loop.
    w1 = [[jnp.full((C, 128), w1_ref[3 * j + k], jnp.float32) for k in range(3)]
          for j in range(3)]
    b1 = [jnp.full((C, 128), b1_ref[j], jnp.float32) for j in range(3)]
    w2 = [[jnp.full((C, 128), w2_ref[3 * j + k], jnp.float32) for k in range(3)]
          for j in range(3)]
    b2 = [jnp.full((C, 128), b2_ref[j], jnp.float32) for j in range(3)]

    def do_chunk(off):
        x0 = x_ref[0, pl.ds(off, C), :]
        x1 = x_ref[1, pl.ds(off, C), :]
        x2 = x_ref[2, pl.ds(off, C), :]
        # Layer 1: h_j = relu(sum_k w1[j, k] * x_k + b1[j])   (PyTorch (out, in) layout)
        h = []
        for j in range(3):
            acc = w1[j][0] * x0 + w1[j][1] * x1 + w1[j][2] * x2 + b1[j]
            h.append(jnp.maximum(acc, 0.0))
        # Layer 2: y_j = sum_k w2[j, k] * h_k + b2[j]; store each chunk immediately.
        for j in range(3):
            y = w2[j][0] * h[0] + w2[j][1] * h[1] + w2[j][2] * h[2] + b2[j]
            o_ref[j, pl.ds(off, C), :] = y.astype(o_ref.dtype)

    if nchunks == 1:
        do_chunk(0)
    else:
        def body(c, carry):
            do_chunk(pl.multiple_of(c * C, C))
            return carry
        lax.fori_loop(0, nchunks, body, 0, unroll=min(8, nchunks))


def _pick_st(nb: int, st_max: int) -> int:
    """Middle-dim (sublane-group) block size for the (3, nb, 128) layout."""
    if nb <= 16:
        return nb  # single grid step; block == full dim, so any size is legal
    # Keep >= 2 grid steps so ("parallel",) can shard tiles across v7x's two TensorCores.
    st = min(st_max, _round_up(pl.cdiv(nb, 2), 8))
    return max(8, st)


@functools.partial(jax.jit, static_argnames=("st_max",))
def my_net_forward(x, w1, b1, w2, b2, *, st_max=1024):
    """x: (B, 3). w1, w2: (3, 3) PyTorch (out, in) layout. b1, b2: (3,). Returns (B, 3)."""
    assert st_max % 8 == 0, "st_max must be a multiple of 8"
    B = x.shape[0]
    nb = pl.cdiv(B, 128)          # number of 128-sample lane groups
    bp = nb * 128

    # Feature-major, sublane-dense layout: (B, 3) -> (3, nb, 128).
    # The transpose/pad exist only to honour the PyTorch (B, 3) contract; a feature-major
    # caller with B % 128 == 0 passes straight through with zero extra HBM traffic.
    x_t = jnp.asarray(x, jnp.float32).T                    # (3, B)
    if bp != B:
        x_t = jnp.pad(x_t, ((0, 0), (0, bp - B)))          # pad only to the next 128 multiple
    x3 = x_t.reshape(3, nb, 128)                           # row-major reshape: free

    w1_flat = jnp.asarray(w1, jnp.float32).reshape(-1)     # (9,) row-major (out, in)
    w2_flat = jnp.asarray(w2, jnp.float32).reshape(-1)     # (9,)
    b1_flat = jnp.asarray(b1, jnp.float32).reshape(-1)     # (3,)
    b2_flat = jnp.asarray(b2, jnp.float32).reshape(-1)     # (3,)

    st = _pick_st(nb, st_max)
    grid = (pl.cdiv(nb, st),)     # ragged last block: OOB reads are garbage, OOB writes masked

    block_bytes = 3 * st * 128 * 4
    dbuf_bytes = 4 * block_bytes  # in + out, double buffered
    vmem_limit = dbuf_bytes + (8 << 20) if dbuf_bytes > (12 << 20) else None

    smem = pl.BlockSpec(memory_space=pltpu.MemorySpace.SMEM)
    out3 = pl.pallas_call(
        mlp_kernel,
        out_shape=jax.ShapeDtypeStruct((3, nb, 128), jnp.float32),
        grid=grid,
        in_specs=[smem, smem, smem, smem,
                  pl.BlockSpec((3, st, 128), lambda i: (0, i, 0))],
        out_specs=pl.BlockSpec((3, st, 128), lambda i: (0, i, 0)),
        compiler_params=pltpu.CompilerParams(
            dimension_semantics=("parallel",),
            vmem_limit_bytes=vmem_limit),
        cost_estimate=pl.CostEstimate(
            flops=42 * bp,
            transcendentals=0,
            bytes_accessed=2 * 3 * bp * 4 + 24 * 4),
    )(w1_flat, b1_flat, w2_flat, b2_flat, x3)

    out_t = out3.reshape(3, bp)
    if bp != B:
        out_t = out_t[:, :B]
    return out_t.T                                         # back to (B, 3)


def reference_forward(x, w1, b1, w2, b2):
    h = jnp.maximum(x @ w1.T + b1, 0.0)
    return h @ w2.T + b2


if __name__ == "__main__":
    key = jax.random.PRNGKey(0)
    kx, k1, k2, k3, k4 = jax.random.split(key, 5)

    # Deterministic parameter init mimicking nn.Linear's uniform(-1/sqrt(in), 1/sqrt(in)).
    bound = 1.0 / jnp.sqrt(3.0)
    w1 = jax.random.uniform(k1, (3, 3), jnp.float32, -bound, bound)   # (out, in)
    b1 = jax.random.uniform(k2, (3,), jnp.float32, -bound, bound)
    w2 = jax.random.uniform(k3, (3, 3), jnp.float32, -bound, bound)
    b2 = jax.random.uniform(k4, (3,), jnp.float32, -bound, bound)

    # (B, expect_pad): exercises single-tile, padded, ragged multi-step and exact-multiple paths.
    for B in (8, 300, 2597, 4096):
        xb = jax.random.normal(kx, (B, 3), dtype=jnp.float32)
        out = my_net_forward(xb, w1, b1, w2, b2)
        jax.block_until_ready(out)
        ref = reference_forward(xb, w1, b1, w2, b2)
        assert out.shape == (B, 3)
        assert jnp.allclose(out, ref, atol=1e-5, rtol=1e-5), f"mismatch at B={B}"

    print("KERNEL_OK")
</pallas_src>

<mosaic_0001>
module attributes {stable_mosaic.version = 11 : i64} {
  func.func @mlp_kernel(%arg0: i32, %arg1: memref<9xf32, #tpu.memory_space<smem>>, %arg2: memref<3xf32, #tpu.memory_space<smem>>, %arg3: memref<9xf32, #tpu.memory_space<smem>>, %arg4: memref<3xf32, #tpu.memory_space<smem>>, %arg5: memref<3x1x128xf32, #tpu.memory_space<vmem>>, %arg6: memref<3x1x128xf32, #tpu.memory_space<vmem>>) attributes {dimension_semantics = [#tpu.dimension_semantics<parallel>], iteration_bounds = array<i64: 1>, scalar_prefetch = 0 : i64, scratch_operands = 0 : i64, tpu.core_type = #tpu.core_type<tc>, window_params = [{transform_indices = @transform_0, window_bounds = array<i64: 9>}, {transform_indices = @transform_1, window_bounds = array<i64: 3>}, {transform_indices = @transform_2, window_bounds = array<i64: 9>}, {transform_indices = @transform_3, window_bounds = array<i64: 3>}, {transform_indices = @transform_4, window_bounds = array<i64: 3, 1, 128>}, {transform_indices = @transform_5, window_bounds = array<i64: 3, 1, 128>}]} {
    %c0 = arith.constant 0 : index
    %0 = memref.load %arg1[%c0] : memref<9xf32, #tpu.memory_space<smem>>
    %1 = vector.broadcast %0 : f32 to vector<1x128xf32>
    %c1 = arith.constant 1 : index
    %2 = memref.load %arg1[%c1] : memref<9xf32, #tpu.memory_space<smem>>
    %3 = vector.broadcast %2 : f32 to vector<1x128xf32>
    %c2 = arith.constant 2 : index
    %4 = memref.load %arg1[%c2] : memref<9xf32, #tpu.memory_space<smem>>
    %5 = vector.broadcast %4 : f32 to vector<1x128xf32>
    %c3 = arith.constant 3 : index
    %6 = memref.load %arg1[%c3] : memref<9xf32, #tpu.memory_space<smem>>
    %7 = vector.broadcast %6 : f32 to vector<1x128xf32>
    %c4 = arith.constant 4 : index
    %8 = memref.load %arg1[%c4] : memref<9xf32, #tpu.memory_space<smem>>
    %9 = vector.broadcast %8 : f32 to vector<1x128xf32>
    %c5 = arith.constant 5 : index
    %10 = memref.load %arg1[%c5] : memref<9xf32, #tpu.memory_space<smem>>
    %11 = vector.broadcast %10 : f32 to vector<1x128xf32>
    %c6 = arith.constant 6 : index
    %12 = memref.load %arg1[%c6] : memref<9xf32, #tpu.memory_space<smem>>
    %13 = vector.broadcast %12 : f32 to vector<1x128xf32>
    %c7 = arith.constant 7 : index
    %14 = memref.load %arg1[%c7] : memref<9xf32, #tpu.memory_space<smem>>
    %15 = vector.broadcast %14 : f32 to vector<1x128xf32>
    %c8 = arith.constant 8 : index
    %16 = memref.load %arg1[%c8] : memref<9xf32, #tpu.memory_space<smem>>
    %17 = vector.broadcast %16 : f32 to vector<1x128xf32>
    %c0_0 = arith.constant 0 : index
    %18 = memref.load %arg2[%c0_0] : memref<3xf32, #tpu.memory_space<smem>>
    %19 = vector.broadcast %18 : f32 to vector<1x128xf32>
    %c1_1 = arith.constant 1 : index
    %20 = memref.load %arg2[%c1_1] : memref<3xf32, #tpu.memory_space<smem>>
    %21 = vector.broadcast %20 : f32 to vector<1x128xf32>
    %c2_2 = arith.constant 2 : index
    %22 = memref.load %arg2[%c2_2] : memref<3xf32, #tpu.memory_space<smem>>
    %23 = vector.broadcast %22 : f32 to vector<1x128xf32>
    %c0_3 = arith.constant 0 : index
    %24 = memref.load %arg3[%c0_3] : memref<9xf32, #tpu.memory_space<smem>>
    %25 = vector.broadcast %24 : f32 to vector<1x128xf32>
    %c1_4 = arith.constant 1 : index
    %26 = memref.load %arg3[%c1_4] : memref<9xf32, #tpu.memory_space<smem>>
    %27 = vector.broadcast %26 : f32 to vector<1x128xf32>
    %c2_5 = arith.constant 2 : index
    %28 = memref.load %arg3[%c2_5] : memref<9xf32, #tpu.memory_space<smem>>
    %29 = vector.broadcast %28 : f32 to vector<1x128xf32>
    %c3_6 = arith.constant 3 : index
    %30 = memref.load %arg3[%c3_6] : memref<9xf32, #tpu.memory_space<smem>>
    %31 = vector.broadcast %30 : f32 to vector<1x128xf32>
    %c4_7 = arith.constant 4 : index
    %32 = memref.load %arg3[%c4_7] : memref<9xf32, #tpu.memory_space<smem>>
    %33 = vector.broadcast %32 : f32 to vector<1x128xf32>
    %c5_8 = arith.constant 5 : index
    %34 = memref.load %arg3[%c5_8] : memref<9xf32, #tpu.memory_space<smem>>
    %35 = vector.broadcast %34 : f32 to vector<1x128xf32>
    %c6_9 = arith.constant 6 : index
    %36 = memref.load %arg3[%c6_9] : memref<9xf32, #tpu.memory_space<smem>>
    %37 = vector.broadcast %36 : f32 to vector<1x128xf32>
    %c7_10 = arith.constant 7 : index
    %38 = memref.load %arg3[%c7_10] : memref<9xf32, #tpu.memory_space<smem>>
    %39 = vector.broadcast %38 : f32 to vector<1x128xf32>
    %c8_11 = arith.constant 8 : index
    %40 = memref.load %arg3[%c8_11] : memref<9xf32, #tpu.memory_space<smem>>
    %41 = vector.broadcast %40 : f32 to vector<1x128xf32>
    %c0_12 = arith.constant 0 : index
    %42 = memref.load %arg4[%c0_12] : memref<3xf32, #tpu.memory_space<smem>>
    %43 = vector.broadcast %42 : f32 to vector<1x128xf32>
    %c1_13 = arith.constant 1 : index
    %44 = memref.load %arg4[%c1_13] : memref<3xf32, #tpu.memory_space<smem>>
    %45 = vector.broadcast %44 : f32 to vector<1x128xf32>
    %c2_14 = arith.constant 2 : index
    %46 = memref.load %arg4[%c2_14] : memref<3xf32, #tpu.memory_space<smem>>
    %47 = vector.broadcast %46 : f32 to vector<1x128xf32>
    %c0_15 = arith.constant 0 : index
    %c0_16 = arith.constant 0 : index
    %c0_17 = arith.constant 0 : index
    %48 = vector.load %arg5[%c0_15, %c0_16, %c0_17] : memref<3x1x128xf32, #tpu.memory_space<vmem>>, vector<1x1x128xf32>
    %49 = vector.shape_cast %48 : vector<1x1x128xf32> to vector<1x128xf32>
    %c1_18 = arith.constant 1 : index
    %c0_19 = arith.constant 0 : index
    %c0_20 = arith.constant 0 : index
    %50 = vector.load %arg5[%c1_18, %c0_19, %c0_20] : memref<3x1x128xf32, #tpu.memory_space<vmem>>, vector<1x1x128xf32>
    %51 = vector.shape_cast %50 : vector<1x1x128xf32> to vector<1x128xf32>
    %c2_21 = arith.constant 2 : index
    %c0_22 = arith.constant 0 : index
    %c0_23 = arith.constant 0 : index
    %52 = vector.load %arg5[%c2_21, %c0_22, %c0_23] : memref<3x1x128xf32, #tpu.memory_space<vmem>>, vector<1x1x128xf32>
    %53 = vector.shape_cast %52 : vector<1x1x128xf32> to vector<1x128xf32>
    %54 = arith.mulf %1, %49 : vector<1x128xf32>
    %55 = arith.mulf %3, %51 : vector<1x128xf32>
    %56 = arith.addf %54, %55 : vector<1x128xf32>
    %57 = arith.mulf %5, %53 : vector<1x128xf32>
    %58 = arith.addf %56, %57 : vector<1x128xf32>
    %59 = arith.addf %58, %19 : vector<1x128xf32>
    %cst = arith.constant 0.000000e+00 : f32
    %60 = vector.broadcast %cst : f32 to vector<1x128xf32>
    %61 = arith.maximumf %59, %60 : vector<1x128xf32>
    %62 = arith.mulf %7, %49 : vector<1x128xf32>
    %63 = arith.mulf %9, %51 : vector<1x128xf32>
    %64 = arith.addf %62, %63 : vector<1x128xf32>
    %65 = arith.mulf %11, %53 : vector<1x128xf32>
    %66 = arith.addf %64, %65 : vector<1x128xf32>
    %67 = arith.addf %66, %21 : vector<1x128xf32>
    %cst_24 = arith.constant 0.000000e+00 : f32
    %68 = vector.broadcast %cst_24 : f32 to vector<1x128xf32>
    %69 = arith.maximumf %67, %68 : vector<1x128xf32>
    %70 = arith.mulf %13, %49 : vector<1x128xf32>
    %71 = arith.mulf %15, %51 : vector<1x128xf32>
    %72 = arith.addf %70, %71 : vector<1x128xf32>
    %73 = arith.mulf %17, %53 : vector<1x128xf32>
    %74 = arith.addf %72, %73 : vector<1x128xf32>
    %75 = arith.addf %74, %23 : vector<1x128xf32>
    %cst_25 = arith.constant 0.000000e+00 : f32
    %76 = vector.broadcast %cst_25 : f32 to vector<1x128xf32>
    %77 = arith.maximumf %75, %76 : vector<1x128xf32>
    %78 = arith.mulf %25, %61 : vector<1x128xf32>
    %79 = arith.mulf %27, %69 : vector<1x128xf32>
    %80 = arith.addf %78, %79 : vector<1x128xf32>
    %81 = arith.mulf %29, %77 : vector<1x128xf32>
    %82 = arith.addf %80, %81 : vector<1x128xf32>
    %83 = arith.addf %82, %43 : vector<1x128xf32>
    %c0_26 = arith.constant 0 : index
    %c0_27 = arith.constant 0 : index
    %c0_28 = arith.constant 0 : index
    %84 = vector.load %arg6[%c0_26, %c0_27, %c0_28] : memref<3x1x128xf32, #tpu.memory_space<vmem>>, vector<1x1x128xf32>
    %85 = vector.shape_cast %84 : vector<1x1x128xf32> to vector<1x128xf32>
    %86 = vector.shape_cast %83 : vector<1x128xf32> to vector<1x1x128xf32>
    tpu.vector_store %arg6[%c0_26, %c0_27, %c0_28], %86 {strides = array<i32>} : memref<3x1x128xf32, #tpu.memory_space<vmem>>, vector<1x1x128xf32>,
    %87 = arith.mulf %31, %61 : vector<1x128xf32>
    %88 = arith.mulf %33, %69 : vector<1x128xf32>
    %89 = arith.addf %87, %88 : vector<1x128xf32>
    %90 = arith.mulf %35, %77 : vector<1x128xf32>
    %91 = arith.addf %89, %90 : vector<1x128xf32>
    %92 = arith.addf %91, %45 : vector<1x128xf32>
    %c1_29 = arith.constant 1 : index
    %c0_30 = arith.constant 0 : index
    %c0_31 = arith.constant 0 : index
    %93 = vector.load %arg6[%c1_29, %c0_30, %c0_31] : memref<3x1x128xf32, #tpu.memory_space<vmem>>, vector<1x1x128xf32>
    %94 = vector.shape_cast %93 : vector<1x1x128xf32> to vector<1x128xf32>
    %95 = vector.shape_cast %92 : vector<1x128xf32> to vector<1x1x128xf32>
    tpu.vector_store %arg6[%c1_29, %c0_30, %c0_31], %95 {strides = array<i32>} : memref<3x1x128xf32, #tpu.memory_space<vmem>>, vector<1x1x128xf32>,
    %96 = arith.mulf %37, %61 : vector<1x128xf32>
    %97 = arith.mulf %39, %69 : vector<1x128xf32>
    %98 = arith.addf %96, %97 : vector<1x128xf32>
    %99 = arith.mulf %41, %77 : vector<1x128xf32>
    %100 = arith.addf %98, %99 : vector<1x128xf32>
    %101 = arith.addf %100, %47 : vector<1x128xf32>
    %c2_32 = arith.constant 2 : index
    %c0_33 = arith.constant 0 : index
    %c0_34 = arith.constant 0 : index
    %102 = vector.load %arg6[%c2_32, %c0_33, %c0_34] : memref<3x1x128xf32, #tpu.memory_space<vmem>>, vector<1x1x128xf32>
    %103 = vector.shape_cast %102 : vector<1x1x128xf32> to vector<1x128xf32>
    %104 = vector.shape_cast %101 : vector<1x128xf32> to vector<1x1x128xf32>
    tpu.vector_store %arg6[%c2_32, %c0_33, %c0_34], %104 {strides = array<i32>} : memref<3x1x128xf32, #tpu.memory_space<vmem>>, vector<1x1x128xf32>,
    return
  }
  func.func @transform_0(%arg0: i32) -> i32 {
    %c0_i32 = arith.constant 0 : i32
    %c0_i32_0 = arith.constant 0 : i32
    return %c0_i32 : i32
  }
  func.func @transform_1(%arg0: i32) -> i32 {
    %c0_i32 = arith.constant 0 : i32
    %c0_i32_0 = arith.constant 0 : i32
    return %c0_i32 : i32
  }
  func.func @transform_2(%arg0: i32) -> i32 {
    %c0_i32 = arith.constant 0 : i32
    %c0_i32_0 = arith.constant 0 : i32
    return %c0_i32 : i32
  }
  func.func @transform_3(%arg0: i32) -> i32 {
    %c0_i32 = arith.constant 0 : i32
    %c0_i32_0 = arith.constant 0 : i32
    return %c0_i32 : i32
  }
  func.func @transform_4(%arg0: i32) -> (i32, i32, i32) {
    %c0_i32 = arith.constant 0 : i32
    %c0_i32_0 = arith.constant 0 : i32
    %c0_i32_1 = arith.constant 0 : i32
    return %c0_i32, %arg0, %c0_i32_0 : i32, i32, i32
  }
  func.func @transform_5(%arg0: i32) -> (i32, i32, i32) {
    %c0_i32 = arith.constant 0 : i32
    %c0_i32_0 = arith.constant 0 : i32
    %c0_i32_1 = arith.constant 0 : i32
    return %c0_i32, %arg0, %c0_i32_0 : i32, i32, i32
  }
}

</mosaic_0001>

<bundles_post_ra>
// kernel: my_net_forward.1
= control target key start
LH: loop header
LB: loop body
LE: loop exit
PB: predicated region body
PF: predicated region fallthrough
CT: control target
= control target key end

     0   :  { %10 = vsyncpa [#allocation3], 0  ;;  %s330_s0 = inlined_call_operand.vmem [shape: f32[9], index: 0, kind: input, shape index: {}]   ;;  %s331_s1 = inlined_call_operand.vmem [shape: f32[3], index: 1, kind: input, shape index: {}]   ;;  %s332_s2 = inlined_call_operand.vmem [shape: f32[9], index: 2, kind: input, shape index: {}]   ;;  %s333_s3 = inlined_call_operand.vmem [shape: f32[3], index: 3, kind: input, shape index: {}]   ;;  %s334_s4 = inlined_call_operand.vmem [shape: f32[3,1,128], index: 4, kind: input, shape index: {}]   ;;  %s335_s5 = inlined_call_operand.vmem [shape: f32[3,1,128], index: 5, kind: output, shape index: {}]  }
   0x1   :  { %11 = vsyncpa [#allocation5], 0  ;;  %s29_s20 = sshll.u32 %s331_s1, 4  ;;  %s30_s20 = int_to_ptr.vmem [resolvable:$true] %s29_s20 }
   0x2   :  { %12 = vsyncpa [#allocation8], 0  ;;  %s19_s23 = sshll.u32 %s330_s0, 4  ;;  %s200_s24 = scalar_lea.vmem %s30_s20, 16  ;;  %s20_s23 = int_to_ptr.vmem [resolvable:$true] %s19_s23 }
   0x3   :  { %p201_p0 = scmp.ne.s32.totalorder %s30_s20, %s200_s24  ;;  %p205_p1 = scmp.lt.s32.totalorder %s30_s20, %s30_s20 }
   0x4   :  { %p206_p2 = scmp.lt.s32.totalorder %s200_s24, %s200_s24 }
   0x6   :  { %p207_p3 = por %p206_p2, %p205_p1 }
   0x8   :  { %p208_p4 = pnand %p207_p3, %p201_p0 }
   0xa   :  { %211 = shalt.err (!%p208_p4)
}
   0xb   :  { %s254_s25 = smov [#allocation4]   ;;  %s212_s26 = scalar_lea.vmem %s20_s23, 16 }
   0xc   :  { %32 = dma.vmem_to_smem %s30_s20, 16, %s254_s25, [#allocation5]  }
   0xd   :  { %p213_p5 = scmp.ne.s32.totalorder %s20_s23, %s212_s26  ;;  %p217_p6 = scmp.lt.s32.totalorder %s20_s23, %s20_s23 }
   0xe   :  { %p218_p7 = scmp.lt.s32.totalorder %s212_s26, %s212_s26 }
  0x10   :  { %p219_p8 = por %p218_p7, %p217_p6 }
  0x12   :  { %p220_p9 = pnand %p219_p8, %p213_p5 }
  0x14   :  { %223 = shalt.err (!%p220_p9)
}
  0x15   :  { %s255_s1 = smov [#allocation2]   ;;  %s39_s28 = sshll.u32 %s332_s2, 4  ;;  %s40_s28 = int_to_ptr.vmem [resolvable:$true] %s39_s28 }
  0x16   :  { %22 = dma.vmem_to_smem %s20_s23, 16, %s255_s1, [#allocation3]  }
  0x17   :  { %s49_s6 = sshll.u32 %s333_s3, 4  ;;  %s224_s7 = scalar_lea.vmem %s40_s28, 16  ;;  %s50_s6 = int_to_ptr.vmem [resolvable:$true] %s49_s6 }
  0x18   :  { %p225_p10 = scmp.ne.s32.totalorder %s40_s28, %s224_s7  ;;  %p229_p11 = scmp.lt.s32.totalorder %s40_s28, %s40_s28 }
  0x19   :  { %p230_p12 = scmp.lt.s32.totalorder %s224_s7, %s224_s7 }
  0x1b   :  { %p231_p13 = por %p230_p12, %p229_p11 }
  0x1d   :  { %p232_p0 = pnand %p231_p13, %p225_p10 }
  0x1f   :  { %235 = shalt.err (!%p232_p0)
}
  0x20   :  { %s256_s8 = smov [#allocation6]   ;;  %s236_s9 = scalar_lea.vmem %s50_s6, 16 }
  0x21   :  { %42 = dma.vmem_to_smem %s40_s28, 16, %s256_s8, [#allocation5]  }
  0x22   :  { %p237_p1 = scmp.ne.s32.totalorder %s50_s6, %s236_s9  ;;  %p241_p2 = scmp.lt.s32.totalorder %s50_s6, %s50_s6 }
  0x23   :  { %p242_p3 = scmp.lt.s32.totalorder %s236_s9, %s236_s9 }
  0x25   :  { %p243_p4 = por %p242_p3, %p241_p2 }
  0x27   :  { %p244_p5 = pnand %p243_p4, %p237_p1 }
  0x29   :  { %247 = shalt.err (!%p244_p5)
}
  0x2a   :  { %s257_s2 = smov [#allocation7]  }
  0x2b   :  { %52 = dma.vmem_to_smem %s50_s6, 16, %s257_s2, [#allocation8]  }
  0x2c   :  { %248 = dma.done.wait [#allocation3], 16  }
  0x2d   :  { %249 = vsyncadd [#allocation3], 4294967280 }
  0x2e   :  { %250 = dma.done.wait [#allocation5], 32  }
  0x2f   :  { %251 = vsyncadd [#allocation5], 4294967264 }
  0x30   :  { %252 = dma.done.wait [#allocation8], 16  }
  0x31   :  { %253 = vsyncadd [#allocation8], 4294967280 }
  0x32   :  { %67 = sfence }
  0x33   :  { %s68_s3 = sld [smem:[#allocation2]]  ;;  %v116_v0 = vld [vmem:[%s334_s4] sm:$0x1]  ;;  %v192_v1 = vld [vmem:[%s334_s4 + $0x1] sm:$0x1] }
  0x34   :  { %s172_s10 = sld [smem:[#allocation2 + $0x1]]  ;;  %v193_v3 = vld [vmem:[%s334_s4 + $0x2] sm:$0x1] }
  0x35   :  { %s173_s11 = sld [smem:[#allocation2 + $0x2]] }
  0x36   :  { %s174_s12 = sld [smem:[#allocation2 + $0x3]] }
  0x37   :  { %s175_s13 = sld [smem:[#allocation2 + $0x4]] }
  0x38   :  { %s176_s16 = sld [smem:[#allocation2 + $0x5]] }
  0x39   :  { %v69_v2 = vstv %s68_s3  ;;  %s177_s19 = sld [smem:[#allocation2 + $0x6]] }
  0x3a   :  { %v71_v4 = vstv %s172_s10  ;;  %s178_s22 = sld [smem:[#allocation2 + $0x7]]  ;;  %v121_v5 = vmul.f32 %v116_v0, %v69_v2 }
  0x3b   :  { %v73_v6 = vstv %s173_s11  ;;  %s179_s23 = sld [smem:[#allocation2 + $0x8]]  ;;  %v122_v7 = vmul.f32 %v192_v1, %v71_v4 }
  0x3c   :  { %v75_v8 = vstv %s174_s12  ;;  %s86_s24 = sld [smem:[#allocation4]]  ;;  %v124_v9 = vmul.f32 %v193_v3, %v73_v6 }
  0x3d   :  { %v77_v10 = vstv %s175_s13  ;;  %s180_s25 = sld [smem:[#allocation4 + $0x1]]  ;;  %v123_v11 = vadd.f32 %v122_v7, %v121_v5  ;;  %v128_v12 = vmul.f32 %v116_v0, %v75_v8 }
  0x3e   :  { %v79_v13 = vstv %s176_s16  ;;  %s309_s26 = sld [smem:[#allocation4 + $0x2]]  ;;  %v129_v14 = vmul.f32 %v192_v1, %v77_v10 }
  0x3f   :  { %v81_v15 = vstv %s177_s19  ;;  %s92_s1 = sld [smem:[#allocation6]]  ;;  %v125_v16 = vadd.f32 %v124_v9, %v123_v11  ;;  %v131_v17 = vmul.f32 %v193_v3, %v79_v13 }
  0x40   :  { %v83_v18 = vstv %s178_s22  ;;  %s182_s4 = sld [smem:[#allocation6 + $0x1]]  ;;  %v130_v19 = vadd.f32 %v129_v14, %v128_v12  ;;  %v135_v20 = vmul.f32 %v116_v0, %v81_v15 }
  0x41   :  { %v85_v21 = vstv %s179_s23  ;;  %s311_s0 = sld [smem:[#allocation6 + $0x2]]  ;;  %v136_v22 = vmul.f32 %v192_v1, %v83_v18 }
  0x42   :  { %v87_v23 = vstv %s86_s24  ;;  %s313_s27 = sld [smem:[#allocation7]]  ;;  %v132_v24 = vadd.f32 %v131_v17, %v130_v19  ;;  %v138_v25 = vmul.f32 %v193_v3, %v85_v21 }
  0x43   :  { %v89_v26 = vstv %s180_s25  ;;  %v126_v27 = vadd.f32 %v125_v16, %v87_v23  ;;  %v137_v28 = vadd.f32 %v136_v22, %v135_v20  ;;  %s184_s28 = sld [smem:[#allocation6 + $0x3]] }
  0x44   :  { %v91_v29 = vstv %s309_s26  ;;  %v133_v30 = vadd.f32 %v132_v24, %v89_v26  ;;  %s185_s29 = sld [smem:[#allocation6 + $0x4]] }
  0x45   :  { %v93_v31 = vstv %s92_s1  ;;  %v127_v32 = vmax.f32 %v126_v27, 0.0  ;;  %v139_v33 = vadd.f32 %v138_v25, %v137_v28  ;;  %s186_s30 = sld [smem:[#allocation6 + $0x5]] }
  0x46   :  { %v95_v34 = vstv %s182_s4  ;;  %v134_v35 = vmax.f32 %v133_v30, 0.0  ;;  %s316_s6 = sld [smem:[#allocation7 + $0x1]] }
  0x47   :  { %v140_v36 = vadd.f32 %v139_v33, %v91_v29  ;;  %v142_v37 = vmul.f32 %v127_v32, %v93_v31  ;;  %s187_s7 = sld [smem:[#allocation6 + $0x6]]  ;;  %v97_v38 = vstv %s311_s0 }
  0x48   :  { %v143_v39 = vmul.f32 %v134_v35, %v95_v34  ;;  %s188_s8 = sld [smem:[#allocation6 + $0x7]]  ;;  %v111_v48 = vstv %s313_s27 }
  0x49   :  { %v141_v40 = vmax.f32 %v140_v36, 0.0  ;;  %v99_v41 = vstv %s184_s28  ;;  %s189_s9 = sld [smem:[#allocation6 + $0x8]] }
  0x4a   :  { %v144_v42 = vadd.f32 %v143_v39, %v142_v37  ;;  %v101_v43 = vstv %s185_s29  ;;  %v149_v44 = vmul.f32 %v127_v32, %v99_v41  ;;  %s191_s2 = sld [smem:[#allocation7 + $0x2]] }
  0x4b   :  { %v145_v45 = vmul.f32 %v141_v40, %v97_v38  ;;  %v103_v46 = vstv %s186_s30  ;;  %v150_v47 = vmul.f32 %v134_v35, %v101_v43 }
  0x4c   :  { %v152_v49 = vmul.f32 %v141_v40, %v103_v46  ;;  %v113_v53 = vstv %s316_s6 }
  0x4d   :  { %v146_v50 = vadd.f32 %v145_v45, %v144_v42  ;;  %v151_v51 = vadd.f32 %v150_v47, %v149_v44  ;;  %v105_v52 = vstv %s187_s7 }
  0x4e   :  { %v107_v54 = vstv %s188_s8  ;;  %v157_v55 = vmul.f32 %v127_v32, %v105_v52 }
  0x4f   :  { %v147_v56 = vadd.f32 %v146_v50, %v111_v48  ;;  %v153_v57 = vadd.f32 %v152_v49, %v151_v51  ;;  %v109_v58 = vstv %s189_s9  ;;  %v158_v59 = vmul.f32 %v134_v35, %v107_v54 }
  0x50   :  { %v160_v60 = vmul.f32 %v141_v40, %v109_v58  ;;  %v115_v63 = vstv %s191_s2 }
  0x51   :  { %148 = vst [vmem:[%s335_s5] sm:$0x1] %v147_v56  ;;  %v154_v61 = vadd.f32 %v153_v57, %v113_v53  ;;  %v159_v62 = vadd.f32 %v158_v59, %v157_v55 }
  0x53   :  { %194 = vst [vmem:[%s335_s5 + $0x1] sm:$0x1] %v154_v61  ;;  %v161_v0 = vadd.f32 %v160_v60, %v159_v62 }
  0x55   :  { %v162_v1 = vadd.f32 %v161_v0, %v115_v63 }
  0x57   :  { %195 = vst [vmem:[%s335_s5 + $0x2] sm:$0x1] %v162_v1 }
  0x58   :  { %169 = vsyncpa [#allocation3], 1 }
  0x59   :  { %170 = vsyncpa [#allocation5], 1 }
  0x5a   :  { %171 = vsyncpa [#allocation8], 1 }

</bundles_post_ra>
